<compile_context>
chip_gen: v7x
topology: tpu7x:2x2x1
jax: 0.10.0
libtpu: 0.0.40
codegen_flags: <defaults>
</compile_context>

<pallas_src>
import math

import jax
import jax.numpy as jnp
from jax.experimental import pallas as pl
from jax.experimental.pallas import tpu as pltpu


def _gelu(x):
    # tanh-approximation gelu, exactly as defined in the PyTorch spec.
    c = math.sqrt(2.0 / math.pi)
    return 0.5 * x * (1.0 + jnp.tanh(c * (x + 0.044715 * x * x * x)))


def fusion_kernel(x_ref, y_ref, w_ref, b_ref, o_ref):
    fd = x_ref.shape[-1]                        # F*D (lane-dense width, 128 when D|128)
    x = x_ref[...].astype(jnp.float32)          # (Tm, FD)
    y = y_ref[...].astype(jnp.float32)          # (Tm, FD)

    # Packed interaction operand: (Tm, 4*FD).  All pieces are lane-aligned.
    cat = jnp.concatenate([x, y, x * y, x - y], axis=-1)
    cat_mm = cat.astype(w_ref.dtype)            # bf16 on v6e/v7x path, f32 otherwise

    # Single fused (r|g) matmul against the block-structured weight, f32 accumulate.
    rg = jnp.dot(cat_mm, w_ref[...], preferred_element_type=jnp.float32) + b_ref[...]

    r = rg[:, :fd]                              # packed like x
    s = rg[:, fd:]                              # packed like x

    x_tilde = _gelu(r)                          # f32 EUP/VPU path
    g = jax.nn.sigmoid(s)

    o_ref[...] = (g * x_tilde + (1.0 - g) * x).astype(o_ref.dtype)


def _pack_factor(d):
    """How many rows to pack into one 128-lane-dense row."""
    if d < 128 and 128 % d == 0:
        return 128 // d
    return 1


def _choose_packed_tile(mp, cap=1024):
    """Packed-row tile: multiple of 8, targets ~8 grid steps, capped at `cap`."""
    if mp <= 8:
        return mp                               # block == full dim, always legal
    tile = min(cap, max(1, mp // 8))
    tile = max(8, (tile // 8) * 8)
    return tile


def _build_fused_weight(params, f, mxu_dtype):
    """Fused r|g weight, block-replicated for the F-way packed row layout.

    W_big[s*F*D + j*D + d, t*F*D + j*D + e] = W_t[s*D + d, e]
      s: interaction segment (x, y, x*y, x-y), j: packed-row index,
      t: projection (0=r, 1=g).
    """
    wr = params["W_r"]                          # (4D, D)
    wg = params["W_g"]                          # (4D, D)
    d = wr.shape[1]
    wt = jnp.stack([wr, wg], axis=0).reshape(2, 4, d, d)      # (t, s, d_in, e)
    eyef = jnp.eye(f, dtype=wr.dtype)
    w_big = jnp.einsum("tsde,jk->sjdtke", wt, eyef).reshape(4 * f * d, 2 * f * d)

    br = params["b_r"].reshape(1, d)
    bg = params["b_g"].reshape(1, d)
    b_big = jnp.concatenate([jnp.tile(br, (1, f)), jnp.tile(bg, (1, f))], axis=-1)
    return w_big.astype(mxu_dtype), b_big.astype(jnp.float32)


def fusion_forward(x, y, params, *, mxu_dtype=jnp.float32, io_dtype=None):
    """Pallas-backed Fusion forward. x, y: (B, P, D) -> (B, P, D)."""
    B, P, D = x.shape
    F = _pack_factor(D)
    FD = F * D
    M = B * P
    Mpad = pl.cdiv(M, F) * F                    # pad only if M not multiple of F
    MP = Mpad // F                              # packed (lane-dense) row count

    x2 = x.reshape(M, D)
    y2 = y.reshape(M, D)
    if io_dtype is not None:
        x2 = x2.astype(io_dtype)                # bf16 I/O halves HBM traffic (v6e/v7x)
        y2 = y2.astype(io_dtype)
    if Mpad != M:
        x2 = jnp.pad(x2, ((0, Mpad - M), (0, 0)))
        y2 = jnp.pad(y2, ((0, Mpad - M), (0, 0)))

    xp = x2.reshape(MP, FD)                     # pure layout plumbing (contiguous)
    yp = y2.reshape(MP, FD)

    w_big, b_big = _build_fused_weight(params, F, mxu_dtype)

    tm = _choose_packed_tile(MP)
    grid = (pl.cdiv(MP, tm),)                   # ragged last block is fine

    row_spec = pl.BlockSpec((tm, FD), lambda i: (i, 0))
    w_spec = pl.BlockSpec((4 * FD, 2 * FD), lambda i: (0, 0))
    b_spec = pl.BlockSpec((1, 2 * FD), lambda i: (0, 0))

    out = pl.pallas_call(
        fusion_kernel,
        out_shape=jax.ShapeDtypeStruct((MP, FD), x2.dtype),
        grid_spec=pltpu.PrefetchScalarGridSpec(
            num_scalar_prefetch=0,
            grid=grid,
            in_specs=[row_spec, row_spec, w_spec, b_spec],
            out_specs=row_spec,
        ),
        compiler_params=pltpu.CompilerParams(
            dimension_semantics=("parallel",)),
    )(xp, yp, w_big, b_big)

    out = out.reshape(Mpad, D)
    if Mpad != M:
        out = out[:M]
    return out.reshape(B, P, D)


def make_params(key, D):
    """Weights stored (in_features, out_features) = PyTorch weight.T."""
    k_r, k_g, k_br, k_bg = jax.random.split(key, 4)
    scale = 1.0 / math.sqrt(4 * D)
    return {
        "W_r": jax.random.uniform(k_r, (4 * D, D), jnp.float32, -scale, scale),
        "b_r": jax.random.uniform(k_br, (1, D), jnp.float32, -scale, scale),
        "W_g": jax.random.uniform(k_g, (4 * D, D), jnp.float32, -scale, scale),
        "b_g": jax.random.uniform(k_bg, (1, D), jnp.float32, -scale, scale),
    }


def reference(x, y, params):
    """Pure-JAX reference matching the PyTorch Fusion.forward (eval mode)."""
    cat = jnp.concatenate([x, y, x * y, x - y], axis=2)
    x_tilde = _gelu(cat @ params["W_r"] + params["b_r"])
    g = jax.nn.sigmoid(cat @ params["W_g"] + params["b_g"])
    return g * x_tilde + (1.0 - g) * x


if __name__ == "__main__":
    key = jax.random.PRNGKey(0)
    k_x, k_y, k_p = jax.random.split(key, 3)

    # Small shape: batch=2, seq=8, hidden=32 (4D = 128 = MXU K; pack factor F=4).
    B, P, D = 2, 8, 32
    x = jax.random.normal(k_x, (B, P, D), jnp.float32)
    y = jax.random.normal(k_y, (B, P, D), jnp.float32)
    params = make_params(k_p, D)
    ref = reference(x, y, params)

    # f32 MXU operands (v5e-safe path) — tight tolerance.
    out_f32 = fusion_forward(x, y, params, mxu_dtype=jnp.float32)
    jax.block_until_ready(out_f32)
    assert jnp.allclose(out_f32, ref, atol=1e-4, rtol=1e-4), "f32 path mismatch"

    # bf16 MXU operands (v6e/v7x throughput path), f32 accumulate — loose tolerance.
    out_bf16 = fusion_forward(x, y, params, mxu_dtype=jnp.bfloat16)
    jax.block_until_ready(out_bf16)
    assert jnp.allclose(out_bf16, ref, atol=5e-2, rtol=5e-2), "bf16 MXU path mismatch"

    # bf16 end-to-end I/O (bandwidth lever on v6e/v7x) — very loose tolerance.
    out_bf16_io = fusion_forward(x, y, params, mxu_dtype=jnp.bfloat16,
                                 io_dtype=jnp.bfloat16)
    jax.block_until_ready(out_bf16_io)
    assert jnp.allclose(out_bf16_io.astype(jnp.float32), ref,
                        atol=1e-1, rtol=1e-1), "bf16 I/O path mismatch"

    # Larger, non-tile-friendly row count: exercises multi-step cdiv grid with a
    # ragged last block (M = 100 rows -> 25 packed rows, tile 8, grid 4).
    B2, P2 = 5, 20
    x2 = jax.random.normal(jax.random.PRNGKey(1), (B2, P2, D), jnp.float32)
    y2 = jax.random.normal(jax.random.PRNGKey(2), (B2, P2, D), jnp.float32)
    ref2 = reference(x2, y2, params)
    out2 = fusion_forward(x2, y2, params, mxu_dtype=jnp.float32)
    jax.block_until_ready(out2)
    assert jnp.allclose(out2, ref2, atol=1e-4, rtol=1e-4), "ragged-grid path mismatch"

    print("KERNEL_OK")
</pallas_src>

<mosaic_0001>
module attributes {stable_mosaic.version = 11 : i64} {
  func.func @fusion_kernel(%arg0: i32, %arg1: memref<4x128xf32, #tpu.memory_space<vmem>>, %arg2: memref<4x128xf32, #tpu.memory_space<vmem>>, %arg3: memref<512x256xf32, #tpu.memory_space<vmem>>, %arg4: memref<1x256xf32, #tpu.memory_space<vmem>>, %arg5: memref<4x128xf32, #tpu.memory_space<vmem>>) attributes {dimension_semantics = [#tpu.dimension_semantics<parallel>], iteration_bounds = array<i64: 1>, scalar_prefetch = 0 : i64, scratch_operands = 0 : i64, tpu.core_type = #tpu.core_type<tc>, window_params = [{transform_indices = @transform_0, window_bounds = array<i64: 4, 128>}, {transform_indices = @transform_1, window_bounds = array<i64: 4, 128>}, {pipeline_mode = #tpu.pipeline_mode<synchronous>, transform_indices = @transform_2, window_bounds = array<i64: 512, 256>}, {pipeline_mode = #tpu.pipeline_mode<synchronous>, transform_indices = @transform_3, window_bounds = array<i64: 1, 256>}, {transform_indices = @transform_4, window_bounds = array<i64: 4, 128>}]} {
    %c0 = arith.constant 0 : index
    %c0_0 = arith.constant 0 : index
    %0 = vector.load %arg1[%c0, %c0_0] : memref<4x128xf32, #tpu.memory_space<vmem>>, vector<4x128xf32>
    %c0_1 = arith.constant 0 : index
    %c0_2 = arith.constant 0 : index
    %1 = vector.load %arg2[%c0_1, %c0_2] : memref<4x128xf32, #tpu.memory_space<vmem>>, vector<4x128xf32>
    %2 = arith.mulf %0, %1 : vector<4x128xf32>
    %3 = arith.subf %0, %1 : vector<4x128xf32>
    %4 = tpu.concatenate %0, %1, %2, %3 in 1 : vector<4x128xf32>, vector<4x128xf32>, vector<4x128xf32>, vector<4x128xf32> -> vector<4x512xf32>
    %c0_3 = arith.constant 0 : index
    %c0_4 = arith.constant 0 : index
    %5 = vector.load %arg3[%c0_3, %c0_4] : memref<512x256xf32, #tpu.memory_space<vmem>>, vector<512x256xf32>
    %cst = arith.constant dense<0.000000e+00> : vector<4x256xf32>
    %6 = tpu.matmul %4, %5, %cst {dimension_numbers = #tpu.dot_dimension_numbers<[1], [0], [0], [1], [0, 0, 1, 1], [], []>} : vector<4x512xf32>, vector<512x256xf32>, vector<4x256xf32> -> vector<4x256xf32>
    %c0_5 = arith.constant 0 : index
    %c0_6 = arith.constant 0 : index
    %7 = vector.load %arg4[%c0_5, %c0_6] : memref<1x256xf32, #tpu.memory_space<vmem>>, vector<1x256xf32>
    %8 = vector.broadcast %7 : vector<1x256xf32> to vector<4x256xf32>
    %9 = arith.addf %6, %8 : vector<4x256xf32>
    %10 = vector.extract_strided_slice %9 {offsets = [0, 0], sizes = [4, 128], strides = [1, 1]} : vector<4x256xf32> to vector<4x128xf32>
    %11 = vector.extract_strided_slice %9 {offsets = [0, 128], sizes = [4, 128], strides = [1, 1]} : vector<4x256xf32> to vector<4x128xf32>
    %cst_7 = arith.constant 5.000000e-01 : f32
    %12 = vector.broadcast %cst_7 : f32 to vector<4x128xf32>
    %13 = arith.mulf %12, %10 : vector<4x128xf32>
    %cst_8 = arith.constant 4.471500e-02 : f32
    %14 = vector.broadcast %cst_8 : f32 to vector<4x128xf32>
    %15 = arith.mulf %14, %10 : vector<4x128xf32>
    %16 = arith.mulf %15, %10 : vector<4x128xf32>
    %17 = arith.mulf %16, %10 : vector<4x128xf32>
    %18 = arith.addf %10, %17 : vector<4x128xf32>
    %cst_9 = arith.constant 0.797884583 : f32
    %19 = vector.broadcast %cst_9 : f32 to vector<4x128xf32>
    %20 = arith.mulf %19, %18 : vector<4x128xf32>
    %21 = math.tanh %20 : vector<4x128xf32>
    %cst_10 = arith.constant 1.000000e+00 : f32
    %22 = vector.broadcast %cst_10 : f32 to vector<4x128xf32>
    %23 = arith.addf %22, %21 : vector<4x128xf32>
    %24 = arith.mulf %13, %23 : vector<4x128xf32>
    %25 = arith.negf %11 : vector<4x128xf32>
    %26 = math.exp %25 : vector<4x128xf32>
    %cst_11 = arith.constant 1.000000e+00 : f32
    %27 = vector.broadcast %cst_11 : f32 to vector<4x128xf32>
    %28 = arith.addf %27, %26 : vector<4x128xf32>
    %29 = arith.divf %27, %28 : vector<4x128xf32>
    %30 = arith.mulf %29, %24 : vector<4x128xf32>
    %cst_12 = arith.constant 1.000000e+00 : f32
    %31 = vector.broadcast %cst_12 : f32 to vector<4x128xf32>
    %32 = arith.subf %31, %29 : vector<4x128xf32>
    %33 = arith.mulf %32, %0 : vector<4x128xf32>
    %34 = arith.addf %30, %33 : vector<4x128xf32>
    %c0_13 = arith.constant 0 : index
    %c0_14 = arith.constant 0 : index
    %35 = vector.load %arg5[%c0_13, %c0_14] : memref<4x128xf32, #tpu.memory_space<vmem>>, vector<4x128xf32>
    tpu.vector_store %arg5[%c0_13, %c0_14], %34 {strides = array<i32>} : memref<4x128xf32, #tpu.memory_space<vmem>>, vector<4x128xf32>,
    return
  }
  func.func @transform_0(%arg0: i32) -> (i32, i32) {
    %c0_i32 = arith.constant 0 : i32
    %c0_i32_0 = arith.constant 0 : i32
    return %arg0, %c0_i32 : i32, i32
  }
  func.func @transform_1(%arg0: i32) -> (i32, i32) {
    %c0_i32 = arith.constant 0 : i32
    %c0_i32_0 = arith.constant 0 : i32
    return %arg0, %c0_i32 : i32, i32
  }
  func.func @transform_2(%arg0: i32) -> (i32, i32) {
    %c0_i32 = arith.constant 0 : i32
    %c0_i32_0 = arith.constant 0 : i32
    %c0_i32_1 = arith.constant 0 : i32
    return %c0_i32, %c0_i32_0 : i32, i32
  }
  func.func @transform_3(%arg0: i32) -> (i32, i32) {
    %c0_i32 = arith.constant 0 : i32
    %c0_i32_0 = arith.constant 0 : i32
    %c0_i32_1 = arith.constant 0 : i32
    return %c0_i32, %c0_i32_0 : i32, i32
  }
  func.func @transform_4(%arg0: i32) -> (i32, i32) {
    %c0_i32 = arith.constant 0 : i32
    %c0_i32_0 = arith.constant 0 : i32
    return %arg0, %c0_i32 : i32, i32
  }
}

</mosaic_0001>

<bundles_post_ra>
// kernel: tpu_custom_call.1
= control target key start
LH: loop header
LB: loop body
LE: loop exit
PB: predicated region body
PF: predicated region fallthrough
CT: control target
= control target key end

     0   :  { %9 = vsyncpa [#allocation3], 0  ;;  %s709_s0 = inlined_call_operand.hbm [shape: f32[4,128], index: 0, kind: input, shape index: {}]   ;;  %s710_s1 = inlined_call_operand.hbm [shape: f32[4,128], index: 1, kind: input, shape index: {}]   ;;  %s711_s2 = inlined_call_operand.hbm [shape: f32[512,256], index: 2, kind: input, shape index: {}]   ;;  %s712_s3 = inlined_call_operand.vmem [shape: f32[1,256], index: 3, kind: input, shape index: {}]   ;;  %s713_s4 = inlined_call_operand.hbm [shape: f32[4,128], index: 4, kind: output, shape index: {}]  }
   0x1   :  { %10 = vsyncpa [#allocation6], 0 }
   0x2   :  { %11 = vsyncpa [#allocation4], 0  ;;  %s616_s15 = smov [#allocation5]   ;;  %s617_s17 = smov [#allocation2]  }
   0x3   :  { %s28_s16 = sshll.u32 %s616_s15, 4  ;;  %s18_s18 = sshll.u32 %s617_s17, 4  ;;  %s29_s16 = int_to_ptr.vmem [resolvable:$true] %s28_s16  ;;  %s19_s18 = int_to_ptr.vmem [resolvable:$true] %s18_s18 }
   0x4   :  { %s522_s21 = scalar_lea.hbm %s710_s1, 64 }
   0x5   :  { %p523_p0 = scmp.ne.s32.totalorder %s710_s1, %s522_s21  ;;  %p526_p1 = scmp.lt.u32.totalorder %s522_s21, %s710_s1 }
   0x7   :  { %p528_p2 = pnand %p526_p1, %p523_p0 }
   0x9   :  { %531 = shalt.err (!%p528_p2)
}
   0xa   :  { %s532_s26 = scalar_lea.vmem %s29_s16, 64  ;;  %p537_p4 = scmp.lt.s32.totalorder %s29_s16, %s29_s16 }
   0xb   :  { %p533_p3 = scmp.ne.s32.totalorder %s29_s16, %s532_s26  ;;  %p538_p5 = scmp.lt.s32.totalorder %s532_s26, %s532_s26 }
   0xd   :  { %p539_p6 = por %p538_p5, %p537_p4 }
   0xf   :  { %p540_p7 = pnand %p539_p6, %p533_p3 }
  0x11   :  { %543 = shalt.err (!%p540_p7)
}
  0x12   :  { %31 = dma.hbm_to_vmem [thread:$0]  %s710_s1, 64, %s29_s16, [#allocation6]  }
  0x13   :  { %s544_s5 = scalar_lea.hbm %s709_s0, 64 }
  0x14   :  { %p545_p8 = scmp.ne.s32.totalorder %s709_s0, %s544_s5  ;;  %p548_p9 = scmp.lt.u32.totalorder %s544_s5, %s709_s0 }
  0x16   :  { %p550_p10 = pnand %p548_p9, %p545_p8 }
  0x18   :  { %553 = shalt.err (!%p550_p10)
}
  0x19   :  { %s554_s10 = scalar_lea.vmem %s19_s18, 64  ;;  %p559_p12 = scmp.lt.s32.totalorder %s19_s18, %s19_s18 }
  0x1a   :  { %p555_p11 = scmp.ne.s32.totalorder %s19_s18, %s554_s10  ;;  %p560_p13 = scmp.lt.s32.totalorder %s554_s10, %s554_s10 }
  0x1c   :  { %p561_p0 = por %p560_p13, %p559_p12 }
  0x1e   :  { %p562_p1 = pnand %p561_p0, %p555_p11 }
  0x20   :  { %565 = shalt.err (!%p562_p1)
}
  0x21   :  { %21 = dma.hbm_to_vmem [thread:$0]  %s709_s0, 64, %s19_s18, [#allocation3]  }
  0x22   :  { %s618_s12 = smov [#allocation7]   ;;  %s566_s16 = scalar_lea.hbm %s711_s2, 16384 }
  0x23   :  { %s37_s13 = sshll.u32 %s618_s12, 4  ;;  %p567_p2 = scmp.ne.s32.totalorder %s711_s2, %s566_s16  ;;  %s38_s13 = int_to_ptr.vmem [resolvable:$true] %s37_s13 }
  0x24   :  { %p570_p3 = scmp.lt.u32.totalorder %s566_s16, %s711_s2 }
  0x26   :  { %p572_p4 = pnand %p570_p3, %p567_p2 }
  0x28   :  { %575 = shalt.err (!%p572_p4)
}
  0x29   :  { %s576_s22 = scalar_lea.vmem %s38_s13, 16384  ;;  %p581_p6 = scmp.lt.s32.totalorder %s38_s13, %s38_s13 }
  0x2a   :  { %p577_p5 = scmp.ne.s32.totalorder %s38_s13, %s576_s22  ;;  %p582_p7 = scmp.lt.s32.totalorder %s576_s22, %s576_s22 }
  0x2c   :  { %p583_p8 = por %p582_p7, %p581_p6 }
  0x2e   :  { %p584_p9 = pnand %p583_p8, %p577_p5 }
  0x30   :  { %587 = shalt.err (!%p584_p9)
}
  0x31   :  { %s619_s0 = smov 256   ;;  %s620_s18 = smov 16  }
  0x32   :  { %43 = dma.hbm_to_vmem [thread:$0]  %s711_s2, 16384, %s38_s13, [#allocation6], %s619_s0, %s619_s0, %s620_s18  }
  0x33   :  { %610 = dma.done.wait [#allocation3], 64  }
  0x34   :  { %611 = vsyncadd [#allocation3], 4294967232 }
  0x35   :  { %612 = dma.done.wait [#allocation6], 16448  }
  0x36   :  { %613 = vsyncadd [#allocation6], 4294950848  ;;  %v60_v0 = vld [vmem:[#allocation7 + $0x8] sm:$0xff]  ;;  %v62_v1 = vld [vmem:[#allocation7 + $0x18] sm:$0xff] }
  0x37   :  { %v59_v2 = vld [vmem:[#allocation7] sm:$0xff]  ;;  %v378_v3 = vpack.c.bf16 %v62_v1, %v60_v0  ;;  %v61_v4 = vld [vmem:[#allocation7 + $0x10] sm:$0xff]  ;;  %v124_v5 = vld [vmem:[#allocation7 + $0x208] sm:$0xff] }
  0x38   :  { %v126_v6 = vld [vmem:[#allocation7 + $0x218] sm:$0xff]  ;;  %v380_v7 = vpack.c.bf16 %v61_v4, %v59_v2  ;;  %v123_v9 = vld [vmem:[#allocation7 + $0x200] sm:$0xff]  ;;  %v125_v10 = vld [vmem:[#allocation7 + $0x210] sm:$0xff] }
  0x39   :  { %v442_v8 = vpack.c.bf16 %v126_v6, %v124_v5  ;;  %v64_v11 = vld [vmem:[#allocation7 + $0x28] sm:$0xff]  ;;  %379 = vmatprep.subr.bf16.mxu1 %v378_v3  ;;  %v444_v12 = vpack.c.bf16 %v125_v10, %v123_v9  ;;  %v66_v13 = vld [vmem:[#allocation7 + $0x38] sm:$0xff]  ;;  %v63_v14 = vld [vmem:[#allocation7 + $0x20] sm:$0xff] }
  0x3a   :  { %v65_v15 = vld [vmem:[#allocation7 + $0x30] sm:$0xff]  ;;  %381 = vmatpush1.bf16.msra.mxu1 %v380_v7  ;;  %v382_v16 = vpack.c.bf16 %v66_v13, %v64_v11  ;;  %v128_v18 = vld [vmem:[#allocation7 + $0x228] sm:$0xff]  ;;  %v130_v19 = vld [vmem:[#allocation7 + $0x238] sm:$0xff] }
  0x3b   :  { %443 = vmatprep.subr.bf16.mxu0 %v442_v8  ;;  %v384_v17 = vpack.c.bf16 %v65_v15, %v63_v14  ;;  %v127_v20 = vld [vmem:[#allocation7 + $0x220] sm:$0xff]  ;;  %v446_v21 = vpack.c.bf16 %v130_v19, %v128_v18  ;;  %v129_v22 = vld [vmem:[#allocation7 + $0x230] sm:$0xff]  ;;  %v68_v23 = vld [vmem:[#allocation7 + $0x48] sm:$0xff] }
  0x3c   :  { %445 = vmatpush1.bf16.msra.mxu0 %v444_v12  ;;  %v70_v24 = vld [vmem:[#allocation7 + $0x58] sm:$0xff]  ;;  %383 = vmatprep.subr.bf16.mxu1 %v382_v16  ;;  %v448_v25 = vpack.c.bf16 %v129_v22, %v127_v20  ;;  %v67_v27 = vld [vmem:[#allocation7 + $0x40] sm:$0xff]  ;;  %v69_v28 = vld [vmem:[#allocation7 + $0x50] sm:$0xff] }
  0x3d   :  { %v386_v26 = vpack.c.bf16 %v70_v24, %v68_v23  ;;  %v132_v29 = vld [vmem:[#allocation7 + $0x248] sm:$0xff]  ;;  %447 = vmatprep.subr.bf16.mxu0 %v446_v21  ;;  %v134_v30 = vld [vmem:[#allocation7 + $0x258] sm:$0xff]  ;;  %v131_v31 = vld [vmem:[#allocation7 + $0x240] sm:$0xff]  ;;  %v388_v33 = vpack.c.bf16 %v69_v28, %v67_v27 }
  0x3e   :  { %v133_v32 = vld [vmem:[#allocation7 + $0x250] sm:$0xff]  ;;  %385 = vmatpush1.bf16.msra.mxu1 %v384_v17  ;;  %v450_v34 = vpack.c.bf16 %v134_v30, %v132_v29  ;;  %v72_v35 = vld [vmem:[#allocation7 + $0x68] sm:$0xff]  ;;  %v74_v36 = vld [vmem:[#allocation7 + $0x78] sm:$0xff] }
  0x3f   :  { %v71_v37 = vld [vmem:[#allocation7 + $0x60] sm:$0xff]  ;;  %387 = vmatprep.subr.bf16.mxu1 %v386_v26  ;;  %v452_v38 = vpack.c.bf16 %v133_v32, %v131_v31  ;;  %v390_v39 = vpack.c.bf16 %v74_v36, %v72_v35  ;;  %v73_v40 = vld [vmem:[#allocation7 + $0x70] sm:$0xff]  ;;  %v136_v41 = vld [vmem:[#allocation7 + $0x268] sm:$0xff] }
  0x40   :  { %449 = vmatpush1.bf16.msra.mxu0 %v448_v25  ;;  %v138_v42 = vld [vmem:[#allocation7 + $0x278] sm:$0xff]  ;;  %v135_v44 = vld [vmem:[#allocation7 + $0x260] sm:$0xff]  ;;  %v137_v45 = vld [vmem:[#allocation7 + $0x270] sm:$0xff]  ;;  %v392_v48 = vpack.c.bf16 %v73_v40, %v71_v37 }
  0x41   :  { %451 = vmatprep.subr.bf16.mxu0 %v450_v34  ;;  %v454_v43 = vpack.c.bf16 %v138_v42, %v136_v41  ;;  %v76_v46 = vld [vmem:[#allocation7 + $0x88] sm:$0xff]  ;;  %v78_v47 = vld [vmem:[#allocation7 + $0x98] sm:$0xff]  ;;  %v456_v51 = vpack.c.bf16 %v137_v45, %v135_v44  ;;  %v75_v53 = vld [vmem:[#allocation7 + $0x80] sm:$0xff] }
  0x42   :  { %389 = vmatpush1.bf16.msra.mxu1 %v388_v33  ;;  %v140_v49 = vld [vmem:[#allocation7 + $0x288] sm:$0xff]  ;;  %v142_v50 = vld [vmem:[#allocation7 + $0x298] sm:$0xff]  ;;  %v394_v52 = vpack.c.bf16 %v78_v47, %v76_v46  ;;  %v77_v54 = vld [vmem:[#allocation7 + $0x90] sm:$0xff] }
  0x43   :  { %391 = vmatprep.subr.bf16.mxu1 %v390_v39  ;;  %v139_v55 = vld [vmem:[#allocation7 + $0x280] sm:$0xff]  ;;  %v458_v56 = vpack.c.bf16 %v142_v50, %v140_v49  ;;  %v141_v57 = vld [vmem:[#allocation7 + $0x290] sm:$0xff]  ;;  %v80_v58 = vld [vmem:[#allocation7 + $0xa8] sm:$0xff]  ;;  %v396_v62 = vpack.c.bf16 %v77_v54, %v75_v53 }
  0x44   :  { %453 = vmatpush1.bf16.msra.mxu0 %v452_v38  ;;  %v82_v59 = vld [vmem:[#allocation7 + $0xb8] sm:$0xff]  ;;  %v144_v60 = vld [vmem:[#allocation7 + $0x2a8] sm:$0xff]  ;;  %v460_v63 = vpack.c.bf16 %v141_v57, %v139_v55  ;;  %v79_v1 = vld [vmem:[#allocation7 + $0xa0] sm:$0xff] }
  0x45   :  { %455 = vmatprep.subr.bf16.mxu0 %v454_v43  ;;  %v146_v61 = vld [vmem:[#allocation7 + $0x2b8] sm:$0xff]  ;;  %v398_v0 = vpack.c.bf16 %v82_v59, %v80_v58  ;;  %v81_v2 = vld [vmem:[#allocation7 + $0xb0] sm:$0xff]  ;;  %v143_v3 = vld [vmem:[#allocation7 + $0x2a0] sm:$0xff] }
  0x46   :  { %393 = vmatpush1.bf16.msra.mxu1 %v392_v48  ;;  %v462_v4 = vpack.c.bf16 %v146_v61, %v144_v60  ;;  %v145_v5 = vld [vmem:[#allocation7 + $0x2b0] sm:$0xff]  ;;  %v84_v6 = vld [vmem:[#allocation7 + $0xc8] sm:$0xff]  ;;  %v86_v7 = vld [vmem:[#allocation7 + $0xd8] sm:$0xff]  ;;  %v400_v10 = vpack.c.bf16 %v81_v2, %v79_v1 }
  0x47   :  { %395 = vmatprep.subr.bf16.mxu1 %v394_v52  ;;  %v148_v8 = vld [vmem:[#allocation7 + $0x2c8] sm:$0xff]  ;;  %v150_v9 = vld [vmem:[#allocation7 + $0x2d8] sm:$0xff]  ;;  %v464_v11 = vpack.c.bf16 %v145_v5, %v143_v3  ;;  %v402_v12 = vpack.c.bf16 %v86_v7, %v84_v6  ;;  %v83_v13 = vld [vmem:[#allocation7 + $0xc0] sm:$0xff] }
  0x48   :  { %457 = vmatpush1.bf16.msra.mxu0 %v456_v51  ;;  %v85_v14 = vld [vmem:[#allocation7 + $0xd0] sm:$0xff]  ;;  %v147_v15 = vld [vmem:[#allocation7 + $0x2c0] sm:$0xff]  ;;  %v466_v16 = vpack.c.bf16 %v150_v9, %v148_v8  ;;  %v88_v18 = vld [vmem:[#allocation7 + $0xe8] sm:$0xff] }
  0x49   :  { %459 = vmatprep.subr.bf16.mxu0 %v458_v56  ;;  %v149_v17 = vld [vmem:[#allocation7 + $0x2d0] sm:$0xff]  ;;  %v90_v19 = vld [vmem:[#allocation7 + $0xf8] sm:$0xff]  ;;  %v152_v20 = vld [vmem:[#allocation7 + $0x2e8] sm:$0xff]  ;;  %v404_v22 = vpack.c.bf16 %v85_v14, %v83_v13 }
  0x4a   :  { %397 = vmatpush1.bf16.msra.mxu1 %v396_v62  ;;  %v154_v21 = vld [vmem:[#allocation7 + $0x2f8] sm:$0xff]  ;;  %v468_v23 = vpack.c.bf16 %v149_v17, %v147_v15  ;;  %v406_v24 = vpack.c.bf16 %v90_v19, %v88_v18  ;;  %v87_v25 = vld [vmem:[#allocation7 + $0xe0] sm:$0xff]  ;;  %v89_v26 = vld [vmem:[#allocation7 + $0xf0] sm:$0xff] }
  0x4b   :  { %399 = vmatprep.subr.bf16.mxu1 %v398_v0  ;;  %v151_v27 = vld [vmem:[#allocation7 + $0x2e0] sm:$0xff]  ;;  %v470_v28 = vpack.c.bf16 %v154_v21, %v152_v20  ;;  %v153_v29 = vld [vmem:[#allocation7 + $0x2f0] sm:$0xff]  ;;  %v92_v30 = vld [vmem:[#allocation7 + $0x108] sm:$0xff]  ;;  %v408_v34 = vpack.c.bf16 %v89_v26, %v87_v25 }
  0x4c   :  { %461 = vmatpush1.bf16.msra.mxu0 %v460_v63  ;;  %v94_v31 = vld [vmem:[#allocation7 + $0x118] sm:$0xff]  ;;  %v156_v32 = vld [vmem:[#allocation7 + $0x308] sm:$0xff]  ;;  %v472_v35 = vpack.c.bf16 %v153_v29, %v151_v27  ;;  %v91_v37 = vld [vmem:[#allocation7 + $0x100] sm:$0xff] }
  0x4d   :  { %463 = vmatprep.subr.bf16.mxu0 %v462_v4  ;;  %v158_v33 = vld [vmem:[#allocation7 + $0x318] sm:$0xff]  ;;  %v410_v36 = vpack.c.bf16 %v94_v31, %v92_v30  ;;  %v93_v38 = vld [vmem:[#allocation7 + $0x110] sm:$0xff]  ;;  %v155_v39 = vld [vmem:[#allocation7 + $0x300] sm:$0xff] }
  0x4e   :  { %401 = vmatpush1.bf16.msra.mxu1 %v400_v10  ;;  %v474_v40 = vpack.c.bf16 %v158_v33, %v156_v32  ;;  %v157_v41 = vld [vmem:[#allocation7 + $0x310] sm:$0xff]  ;;  %v96_v42 = vld [vmem:[#allocation7 + $0x128] sm:$0xff]  ;;  %v98_v43 = vld [vmem:[#allocation7 + $0x138] sm:$0xff]  ;;  %v412_v46 = vpack.c.bf16 %v93_v38, %v91_v37 }
  0x4f   :  { %403 = vmatprep.subr.bf16.mxu1 %v402_v12  ;;  %v160_v44 = vld [vmem:[#allocation7 + $0x328] sm:$0xff]  ;;  %v162_v45 = vld [vmem:[#allocation7 + $0x338] sm:$0xff]  ;;  %v476_v47 = vpack.c.bf16 %v157_v41, %v155_v39  ;;  %v414_v48 = vpack.c.bf16 %v98_v43, %v96_v42  ;;  %v95_v49 = vld [vmem:[#allocation7 + $0x120] sm:$0xff] }
  0x50   :  { %465 = vmatpush1.bf16.msra.mxu0 %v464_v11  ;;  %v97_v50 = vld [vmem:[#allocation7 + $0x130] sm:$0xff]  ;;  %v159_v51 = vld [vmem:[#allocation7 + $0x320] sm:$0xff]  ;;  %v478_v52 = vpack.c.bf16 %v162_v45, %v160_v44  ;;  %v100_v54 = vld [vmem:[#allocation7 + $0x148] sm:$0xff] }
  0x51   :  { %467 = vmatprep.subr.bf16.mxu0 %v466_v16  ;;  %v161_v53 = vld [vmem:[#allocation7 + $0x330] sm:$0xff]  ;;  %v102_v55 = vld [vmem:[#allocation7 + $0x158] sm:$0xff]  ;;  %v164_v56 = vld [vmem:[#allocation7 + $0x348] sm:$0xff]  ;;  %v416_v58 = vpack.c.bf16 %v97_v50, %v95_v49 }
  0x52   :  { %405 = vmatpush1.bf16.msra.mxu1 %v404_v22  ;;  %v166_v57 = vld [vmem:[#allocation7 + $0x358] sm:$0xff]  ;;  %v480_v59 = vpack.c.bf16 %v161_v53, %v159_v51  ;;  %v418_v60 = vpack.c.bf16 %v102_v55, %v100_v54  ;;  %v99_v61 = vld [vmem:[#allocation7 + $0x140] sm:$0xff]  ;;  %v101_v62 = vld [vmem:[#allocation7 + $0x150] sm:$0xff] }
  0x53   :  { %407 = vmatprep.subr.bf16.mxu1 %v406_v24  ;;  %v163_v63 = vld [vmem:[#allocation7 + $0x340] sm:$0xff]  ;;  %v482_v0 = vpack.c.bf16 %v166_v57, %v164_v56  ;;  %v165_v1 = vld [vmem:[#allocation7 + $0x350] sm:$0xff]  ;;  %v104_v2 = vld [vmem:[#allocation7 + $0x168] sm:$0xff]  ;;  %v420_v6 = vpack.c.bf16 %v101_v62, %v99_v61 }
  0x54   :  { %469 = vmatpush1.bf16.msra.mxu0 %v468_v23  ;;  %v106_v3 = vld [vmem:[#allocation7 + $0x178] sm:$0xff]  ;;  %v168_v4 = vld [vmem:[#allocation7 + $0x368] sm:$0xff]  ;;  %v103_v7 = vld [vmem:[#allocation7 + $0x160] sm:$0xff]  ;;  %v484_v8 = vpack.c.bf16 %v165_v1, %v163_v63 }
  0x55   :  { %471 = vmatprep.subr.bf16.mxu0 %v470_v28  ;;  %v170_v5 = vld [vmem:[#allocation7 + $0x378] sm:$0xff]  ;;  %v422_v9 = vpack.c.bf16 %v106_v3, %v104_v2  ;;  %v105_v10 = vld [vmem:[#allocation7 + $0x170] sm:$0xff]  ;;  %v167_v11 = vld [vmem:[#allocation7 + $0x360] sm:$0xff] }
  0x56   :  { %409 = vmatpush1.bf16.msra.mxu1 %v408_v34  ;;  %v169_v12 = vld [vmem:[#allocation7 + $0x370] sm:$0xff]  ;;  %v486_v13 = vpack.c.bf16 %v170_v5, %v168_v4  ;;  %v108_v14 = vld [vmem:[#allocation7 + $0x188] sm:$0xff]  ;;  %v110_v15 = vld [vmem:[#allocation7 + $0x198] sm:$0xff]  ;;  %v424_v20 = vpack.c.bf16 %v105_v10, %v103_v7  ;;  %v189_v4 = vlaneseq }
  0x57   :  { %411 = vmatprep.subr.bf16.mxu1 %v410_v36  ;;  %v683_v16 = vld [vmem:[#allocation5] sm:$0xf]  ;;  %v172_v17 = vld [vmem:[#allocation7 + $0x388] sm:$0xff]  ;;  %v686_v19 = vld [vmem:[#allocation2] sm:$0xf]  ;;  %v488_v22 = vpack.c.bf16 %v169_v12, %v167_v11  ;;  %v426_v23 = vpack.c.bf16 %v110_v15, %v108_v14 }
  0x58   :  { %473 = vmatpush1.bf16.msra.mxu0 %v472_v35  ;;  %v174_v18 = vld [vmem:[#allocation7 + $0x398] sm:$0xff]  ;;  %263 = vmatprep.mubr.f32.mxu1 %v683_v16  ;;  %v58_v21 = vsub.f32 %v686_v19, %v683_v16  ;;  %v107_v24 = vld [vmem:[#allocation7 + $0x180] sm:$0xff]  ;;  %v109_v25 = vld [vmem:[#allocation7 + $0x190] sm:$0xff]  ;;  %v57_v3 = vmul.f32 %v683_v16, %v686_v19  ;;  %v190_v5 = vshrl.u32 %v189_v4, 7 }
  0x59   :  { %475 = vmatprep.subr.bf16.mxu0 %v474_v40  ;;  %v171_v26 = vld [vmem:[#allocation7 + $0x380] sm:$0xff]  ;;  %v490_v27 = vpack.c.bf16 %v174_v18, %v172_v17  ;;  %v173_v28 = vld [vmem:[#allocation7 + $0x390] sm:$0xff]  ;;  %v112_v29 = vld [vmem:[#allocation7 + $0x1a8] sm:$0xff]  ;;  %v428_v33 = vpack.c.bf16 %v109_v25, %v107_v24 }
  0x5a   :  { %413 = vmatpush1.bf16.msra.mxu1 %v412_v46  ;;  %v114_v30 = vld [vmem:[#allocation7 + $0x1b8] sm:$0xff]  ;;  %334 = vmatprep.mubr.f32.mxu0 %v58_v21  ;;  %v176_v31 = vld [vmem:[#allocation7 + $0x3a8] sm:$0xff]  ;;  %v492_v34 = vpack.c.bf16 %v173_v28, %v171_v26  ;;  %v111_v36 = vld [vmem:[#allocation7 + $0x1a0] sm:$0xff] }
  0x5b   :  { %415 = vmatprep.subr.bf16.mxu1 %v414_v48  ;;  %v178_v32 = vld [vmem:[#allocation7 + $0x3b8] sm:$0xff]  ;;  %v430_v35 = vpack.c.bf16 %v114_v30, %v112_v29  ;;  %v113_v37 = vld [vmem:[#allocation7 + $0x1b0] sm:$0xff]  ;;  %v175_v38 = vld [vmem:[#allocation7 + $0x3a0] sm:$0xff] }
  0x5c   :  { %477 = vmatpush1.bf16.msra.mxu0 %v476_v47  ;;  %v494_v39 = vpack.c.bf16 %v178_v32, %v176_v31  ;;  %v177_v40 = vld [vmem:[#allocation7 + $0x3b0] sm:$0xff]  ;;  %v116_v41 = vld [vmem:[#allocation7 + $0x1c8] sm:$0xff]  ;;  %v118_v42 = vld [vmem:[#allocation7 + $0x1d8] sm:$0xff]  ;;  %v432_v45 = vpack.c.bf16 %v113_v37, %v111_v36 }
  0x5d   :  { %479 = vmatprep.subr.bf16.mxu0 %v478_v52  ;;  %v180_v43 = vld [vmem:[#allocation7 + $0x3c8] sm:$0xff]  ;;  %v182_v44 = vld [vmem:[#allocation7 + $0x3d8] sm:$0xff]  ;;  %v496_v46 = vpack.c.bf16 %v177_v40, %v175_v38  ;;  %v434_v47 = vpack.c.bf16 %v118_v42, %v116_v41  ;;  %v115_v48 = vld [vmem:[#allocation7 + $0x1c0] sm:$0xff] }
  0x5e   :  { %417 = vmatpush1.bf16.msra.mxu1 %v416_v58  ;;  %v117_v49 = vld [vmem:[#allocation7 + $0x1d0] sm:$0xff]  ;;  %v179_v50 = vld [vmem:[#allocation7 + $0x3c0] sm:$0xff]  ;;  %v498_v51 = vpack.c.bf16 %v182_v44, %v180_v43  ;;  %v120_v53 = vld [vmem:[#allocation7 + $0x1e8] sm:$0xff] }
  0x5f   :  { %419 = vmatprep.subr.bf16.mxu1 %v418_v60  ;;  %v181_v52 = vld [vmem:[#allocation7 + $0x3d0] sm:$0xff]  ;;  %v122_v54 = vld [vmem:[#allocation7 + $0x1f8] sm:$0xff]  ;;  %v184_v55 = vld [vmem:[#allocation7 + $0x3e8] sm:$0xff]  ;;  %v436_v57 = vpack.c.bf16 %v117_v49, %v115_v48 }
  0x60   :  { %481 = vmatpush1.bf16.msra.mxu0 %v480_v59  ;;  %v186_v56 = vld [vmem:[#allocation7 + $0x3f8] sm:$0xff]  ;;  %v500_v58 = vpack.c.bf16 %v181_v52, %v179_v50  ;;  %v438_v59 = vpack.c.bf16 %v122_v54, %v120_v53  ;;  %v119_v60 = vld [vmem:[#allocation7 + $0x1e0] sm:$0xff]  ;;  %v121_v61 = vld [vmem:[#allocation7 + $0x1f0] sm:$0xff] }
  0x61   :  { %483 = vmatprep.subr.bf16.mxu0 %v482_v0  ;;  %v502_v62 = vpack.c.bf16 %v186_v56, %v184_v55  ;;  %v183_v63 = vld [vmem:[#allocation7 + $0x3e0] sm:$0xff]  ;;  %v185_v0 = vld [vmem:[#allocation7 + $0x3f0] sm:$0xff]  ;;  %v440_v1 = vpack.c.bf16 %v121_v61, %v119_v60  ;;  %v187_v7 = vld [vmem:[%s712_s3] sm:$0x3]  ;;  %s621_s3 = smov [#allocation8]  }
  0x62   :  { %421 = vmatpush1.bf16.msra.mxu1 %v420_v6  ;;  %v504_v2 = vpack.c.bf16 %v185_v0, %v183_v63  ;;  %v191_v6 = vsub.s32 0, %v190_v5  ;;  %s367_s26 = sshll.u32 %s621_s3, 4  ;;  %s368_s26 = int_to_ptr.vmem [resolvable:$true] %s367_s26 }
  0x63   :  { %423 = vmatprep.subr.bf16.mxu1 %v422_v9  ;;  %s588_s27 = scalar_lea.vmem %s368_s26, 64  ;;  %p593_p11 = scmp.lt.s32.totalorder %s368_s26, %s368_s26 }
  0x64   :  { %485 = vmatpush1.bf16.msra.mxu0 %v484_v8  ;;  %v195_v8 = vsub.s32 1, %v190_v5  ;;  %v192_v9 = vrot.slane %v187_v7, %v191_v6  ;;  %p589_p10 = scmp.ne.s32.totalorder %s368_s26, %s588_s27  ;;  %p594_p12 = scmp.lt.s32.totalorder %s588_s27, %s588_s27 }
  0x65   :  { %487 = vmatprep.subr.bf16.mxu0 %v486_v13 }
  0x66   :  { %425 = vmatpush1.bf16.msra.mxu1 %v424_v20  ;;  %v196_v10 = vrot.slane %v187_v7, %v195_v8  ;;  %p595_p13 = por %p594_p12, %p593_p11 }
  0x67   :  { %427 = vmatprep.subr.bf16.mxu1 %v426_v23 }
  0x68   :  { %489 = vmatpush1.bf16.msra.mxu0 %v488_v22  ;;  %p596_p0 = pnand %p595_p13, %p589_p10 }
  0x69   :  { %491 = vmatprep.subr.bf16.mxu0 %v490_v27 }
  0x6a   :  { %429 = vmatpush1.bf16.msra.mxu1 %v428_v33 }
  0x6b   :  { %431 = vmatprep.subr.bf16.mxu1 %v430_v35 }
  0x6c   :  { %493 = vmatpush1.bf16.msra.mxu0 %v492_v34 }
  0x6d   :  { %495 = vmatprep.subr.bf16.mxu0 %v494_v39 }
  0x6e   :  { %433 = vmatpush1.bf16.msra.mxu1 %v432_v45 }
  0x6f   :  { %435 = vmatprep.subr.bf16.mxu1 %v434_v47 }
  0x70   :  { %497 = vmatpush1.bf16.msra.mxu0 %v496_v46 }
  0x71   :  { %499 = vmatprep.subr.bf16.mxu0 %v498_v51 }
  0x72   :  { %437 = vmatpush1.bf16.msra.mxu1 %v436_v57 }
  0x73   :  { %439 = vmatprep.subr.bf16.mxu1 %v438_v59 }
  0x74   :  { %501 = vmatpush1.bf16.msra.mxu0 %v500_v58 }
  0x75   :  { %503 = vmatprep.subr.bf16.mxu0 %v502_v62 }
  0x76   :  { %441 = vmatpush1.bf16.msra.mxu1 %v440_v1 }
  0x78   :  { %505 = vmatpush1.bf16.msra.mxu0 %v504_v2 }
  0x79   :  { %264 = vmatmul.mubr.f32.vlgmr.msra.gmra.mrb[0].mxu1 %v686_v19 }
  0x7b   :  { %335 = vmatmul.mubr.f32.vlgmr.msra.gmra.mrb[0].mxu0 %v57_v3 }
 0x14c   :  { %v265_v11 = vpop.f32.mrb[0].mxu1 }
 0x14d   :  { %v266_v12 = vadd.f32 %v265_v11, %v192_v9  ;;  %v267_v13 = vpop.f32.mrb[1].mxu1 }
 0x14e   :  { %v336_v14 = vpop.f32.mrb[0].mxu0  ;;  %v268_v15 = vadd.f32 %v267_v13, %v196_v10 }
 0x14f   :  { %v338_v16 = vpop.f32.mrb[1].mxu0  ;;  %v337_v17 = vadd.f32 %v336_v14, %v266_v12 }
 0x150   :  { %v339_v18 = vadd.f32 %v338_v16, %v268_v15 }
 0x151   :  { %v342_v20 = vmul.f32 0.044715, %v337_v17  ;;  %v341_v30 = vmul.f32 0.5, %v337_v17 }
 0x152   :  { %v377_v21 = vmul.f32 -1.442695, %v339_v18 }
 0x153   :  { %v343_v22 = vmul.f32 %v342_v20, %v337_v17 }
 0x154   :  { %516 = vpow2.f32 %v377_v21 }
 0x155   :  { %v344_v23 = vmul.f32 %v343_v22, %v337_v17 }
 0x157   :  { %v345_v24 = vadd.f32 %v344_v23, %v337_v17 }
 0x159   :  { %v346_v25 = vmul.f32 0.7978846, %v345_v24 }
 0x15b   :  { %518 = vtanh.f32 %v346_v25 }
 0x15e   :  { %v517_v26 = vpop.eup %516 }
 0x15f   :  { %v353_v27 = vadd.f32 1.0, %v517_v26 }
 0x161   :  { %520 = vrcp.f32 %v353_v27 }
 0x165   :  { %v519_v28 = vpop.eup %518 }
 0x166   :  { %v348_v29 = vadd.f32 1.0, %v519_v28 }
 0x168   :  { %v349_v31 = vmul.f32 %v348_v29, %v341_v30 }
 0x16b   :  { %v521_v32 = vpop.eup %520 }
 0x16c   :  { %v356_v33 = vmul.f32 %v521_v32, %v349_v31  ;;  %v357_v34 = vsub.f32 1.0, %v521_v32 }
 0x16e   :  { %v358_v35 = vmul.f32 %v357_v34, %v686_v19 }
 0x170   :  { %v359_v36 = vadd.f32 %v358_v35, %v356_v33 }
 0x172   :  { %360 = vst [vmem:[#allocation8] sm:$0xf] %v359_v36 }
 0x173   :  { %599 = shalt.err (!%p596_p0)
}
 0x174   :  { %s600_s30 = scalar_lea.hbm %s713_s4, 64 }
 0x175   :  { %p601_p1 = scmp.ne.s32.totalorder %s713_s4, %s600_s30  ;;  %p604_p2 = scmp.lt.u32.totalorder %s600_s30, %s713_s4 }
 0x177   :  { %p606_p3 = pnand %p604_p2, %p601_p1 }
 0x179   :  { %609 = shalt.err (!%p606_p3)
}
 0x17a   :  { %370 = dma.vmem_to_hbm [thread:$0]  %s368_s26, 64, %s713_s4, [#allocation4]  }
 0x17b   :  { %614 = dma.done.wait [#allocation4], 64  }
 0x17c   :  { %615 = vsyncadd [#allocation4], 4294967232 }
 0x17d   :  { %374 = vsyncpa [#allocation3], 1 }
 0x17e   :  { %375 = vsyncpa [#allocation6], 1 }
 0x17f   :  { %376 = vsyncpa [#allocation4], 1 }

</bundles_post_ra>
